<compile_context>
chip_gen: v7x
topology: tpu7x:2x2x1
jax: 0.10.0
libtpu: 0.0.40
codegen_flags: <defaults>
</compile_context>

<pallas_src>
import functools

import jax
import jax.numpy as jnp
from jax.experimental import pallas as pl
from jax.experimental.pallas import tpu as pltpu

IGNORE_INDEX = 255

# Target bytes for one logits block.  ~2 MiB keeps per-step DMA time well above
# the ~0.35 us grid-step overhead while staying far below the scoped VMEM limit
# on every generation (v5e/v6e 128 MiB, v7x 64 MiB physical) once double-buffered.
_BLOCK_BYTES_TARGET = 2 * 1024 * 1024


def _ce2d_kernel(x_ref, t_ref, sum_ref, cnt_ref, *, hw, tile_p):
    """One grid cell: partial NLL sum + valid-pixel count for a (C, TILE_P) slab."""
    p = pl.program_id(1)

    x = x_ref[0].astype(jnp.float32)   # (C, TILE_P)  channels on sublanes
    t = t_ref[0]                       # (1, TILE_P)  int32 targets
    c = x.shape[0]

    # Mask pixels past the end of the image (tail tile) and ignored pixels.
    # Out-of-bounds lanes of the tail block hold unspecified data; jnp.where
    # (select, not multiply) keeps any NaN/Inf garbage from leaking through.
    pix = jax.lax.broadcasted_iota(jnp.int32, (1, tile_p), 1) + p * tile_p
    valid = jnp.logical_and(pix < hw, t != IGNORE_INDEX)      # (1, TILE_P) bool

    # Numerically stable logsumexp over the channel (sublane) axis.
    m = jnp.max(x, axis=0, keepdims=True)                               # (1, TILE_P)
    lse = jnp.log(jnp.sum(jnp.exp(x - m), axis=0, keepdims=True))       # (1, TILE_P)

    # Gather x[target] via a one-hot select over channels (no dynamic gather on TPU).
    ch = jax.lax.broadcasted_iota(jnp.int32, (c, tile_p), 0)            # (C, TILE_P)
    x_tgt = jnp.sum(jnp.where(ch == t, x, 0.0), axis=0, keepdims=True)  # (1, TILE_P)

    # -log_softmax(x)[target] = (m + lse) - x[target]
    loss = jnp.where(valid, (m + lse) - x_tgt, 0.0)                     # (1, TILE_P)

    part_sum = jnp.sum(loss, keepdims=True)                             # (1, 1)
    part_cnt = jnp.sum(valid.astype(jnp.float32), keepdims=True)        # (1, 1)

    # Lane-aligned per-grid-cell partials: scalar in lane 0, zeros elsewhere.
    lane = jax.lax.broadcasted_iota(jnp.int32, (1, 128), 1)
    sum_ref[...] = jnp.where(lane == 0, part_sum, 0.0)
    cnt_ref[...] = jnp.where(lane == 0, part_cnt, 0.0)


@jax.jit
def cross_entropy_loss_2d(inputs, targets):
    """inputs: (N, C, H, W) float, targets: (N, H, W) int.

    Returns the mean of -log_softmax(inputs, axis=1)[n, targets, h, w] over all
    pixels whose target != 255 (matching nn.NLLLoss2d(size_average=True,
    ignore_index=255)).  If every pixel is ignored the result is NaN, matching
    PyTorch's behavior.
    """
    N, C, H, W = inputs.shape
    HW = H * W

    x = inputs.reshape(N, C, HW)                       # free reshape of NCHW
    t = targets.reshape(N, 1, HW).astype(jnp.int32)

    # Pick the pixel tile: largest multiple of 128 whose logits block is ~2 MiB.
    itemsize = jnp.dtype(inputs.dtype).itemsize
    tile_p = max(128, (_BLOCK_BYTES_TARGET // (C * itemsize)) // 128 * 128)
    if HW <= tile_p:
        tile_p = HW          # single full-extent tile per image (always legal)
    grid_p = pl.cdiv(HW, tile_p)
    grid = (N, grid_p)
    n_cells = N * grid_p

    kernel = functools.partial(_ce2d_kernel, hw=HW, tile_p=tile_p)

    out_sum, out_cnt = pl.pallas_call(
        kernel,
        out_shape=(
            jax.ShapeDtypeStruct((1, n_cells * 128), jnp.float32),
            jax.ShapeDtypeStruct((1, n_cells * 128), jnp.float32),
        ),
        grid_spec=pltpu.PrefetchScalarGridSpec(
            num_scalar_prefetch=0,
            grid=grid,
            in_specs=[
                pl.BlockSpec((1, C, tile_p), lambda n, p: (n, 0, p)),
                pl.BlockSpec((1, 1, tile_p), lambda n, p: (n, 0, p)),
            ],
            out_specs=[
                pl.BlockSpec((1, 128), lambda n, p: (0, n * grid_p + p)),
                pl.BlockSpec((1, 128), lambda n, p: (0, n * grid_p + p)),
            ],
        ),
        compiler_params=pltpu.CompilerParams(
            dimension_semantics=("parallel", "parallel"),
            vmem_limit_bytes=32 * 1024 * 1024,
        ),
    )(x, t)

    # Tiny final reduction + size_average division in plain XLA.
    return (jnp.sum(out_sum) / jnp.sum(out_cnt)).astype(jnp.float32)


def _reference(inputs, targets):
    """Pure-JAX reference for sanity checking."""
    logp = jax.nn.log_softmax(inputs.astype(jnp.float32), axis=1)   # (N, C, H, W)
    t = targets.astype(jnp.int32)
    valid = t != IGNORE_INDEX
    t_safe = jnp.where(valid, t, 0)
    gathered = jnp.take_along_axis(logp, t_safe[:, None, :, :], axis=1)[:, 0]
    loss = jnp.where(valid, -gathered, 0.0)
    return jnp.sum(loss) / jnp.sum(valid)


if __name__ == "__main__":
    key = jax.random.PRNGKey(0)
    k1, k2, k3 = jax.random.split(key, 3)

    N, C, H, W = 2, 4, 16, 16
    inputs = jax.random.normal(k1, (N, C, H, W), dtype=jnp.float32)
    targets = jax.random.randint(k2, (N, H, W), 0, C, dtype=jnp.int32)
    # sprinkle some ignore_index pixels
    ignore_mask = jax.random.uniform(k3, (N, H, W)) < 0.1
    targets = jnp.where(ignore_mask, IGNORE_INDEX, targets)

    loss = cross_entropy_loss_2d(inputs, targets)
    jax.block_until_ready(loss)

    ref = _reference(inputs, targets)
    assert jnp.allclose(loss, ref, atol=1e-5, rtol=1e-5), (loss, ref)

    print("KERNEL_OK")
</pallas_src>

<mosaic_0001>
module attributes {stable_mosaic.version = 11 : i64} {
  func.func @_ce2d_kernel(%arg0: i32, %arg1: i32, %arg2: memref<1x4x256xf32, #tpu.memory_space<vmem>>, %arg3: memref<1x1x256xi32, #tpu.memory_space<vmem>>, %arg4: memref<1x128xf32, #tpu.memory_space<vmem>>, %arg5: memref<1x128xf32, #tpu.memory_space<vmem>>) attributes {dimension_semantics = [#tpu.dimension_semantics<parallel>, #tpu.dimension_semantics<parallel>], iteration_bounds = array<i64: 2, 1>, scalar_prefetch = 0 : i64, scratch_operands = 0 : i64, tpu.core_type = #tpu.core_type<tc>, window_params = [{transform_indices = @transform_0, window_bounds = array<i64: 1, 4, 256>}, {transform_indices = @transform_1, window_bounds = array<i64: 1, 1, 256>}, {transform_indices = @transform_2, window_bounds = array<i64: 1, 128>}, {transform_indices = @transform_3, window_bounds = array<i64: 1, 128>}]} {
    %c0 = arith.constant 0 : index
    %c0_0 = arith.constant 0 : index
    %c0_1 = arith.constant 0 : index
    %0 = vector.load %arg2[%c0, %c0_0, %c0_1] : memref<1x4x256xf32, #tpu.memory_space<vmem>>, vector<1x4x256xf32>
    %1 = vector.shape_cast %0 : vector<1x4x256xf32> to vector<4x256xf32>
    %c0_2 = arith.constant 0 : index
    %c0_3 = arith.constant 0 : index
    %c0_4 = arith.constant 0 : index
    %2 = vector.load %arg3[%c0_2, %c0_3, %c0_4] : memref<1x1x256xi32, #tpu.memory_space<vmem>>, vector<1x1x256xi32>
    %3 = vector.shape_cast %2 : vector<1x1x256xi32> to vector<1x256xi32>
    %4 = tpu.iota {dimensions = array<i32: 1>} : vector<1x256xi32>
    %c256_i32 = arith.constant 256 : i32
    %5 = arith.muli %arg1, %c256_i32 : i32
    %6 = vector.broadcast %5 : i32 to vector<1x256xi32>
    %7 = arith.addi %4, %6 : vector<1x256xi32>
    %c256_i32_5 = arith.constant 256 : i32
    %8 = vector.broadcast %c256_i32_5 : i32 to vector<1x256xi32>
    %9 = arith.cmpi slt, %7, %8 : vector<1x256xi32>
    %c255_i32 = arith.constant 255 : i32
    %10 = vector.broadcast %c255_i32 : i32 to vector<1x256xi32>
    %11 = arith.cmpi ne, %3, %10 : vector<1x256xi32>
    %12 = arith.andi %9, %11 : vector<1x256xi1>
    %cst = arith.constant dense<0xFF800000> : vector<256xf32>
    %13 = vector.multi_reduction <maximumf>, %1, %cst [0] : vector<4x256xf32> to vector<256xf32>
    %14 = vector.shape_cast %13 : vector<256xf32> to vector<1x256xf32>
    %15 = vector.broadcast %14 : vector<1x256xf32> to vector<4x256xf32>
    %16 = arith.subf %1, %15 : vector<4x256xf32>
    %17 = math.exp %16 : vector<4x256xf32>
    %cst_6 = arith.constant dense<0.000000e+00> : vector<256xf32>
    %18 = vector.multi_reduction <add>, %17, %cst_6 [0] : vector<4x256xf32> to vector<256xf32>
    %19 = vector.shape_cast %18 : vector<256xf32> to vector<1x256xf32>
    %20 = math.log %19 : vector<1x256xf32>
    %21 = tpu.iota {dimensions = array<i32: 0>} : vector<4x256xi32>
    %22 = vector.broadcast %3 : vector<1x256xi32> to vector<4x256xi32>
    %23 = arith.cmpi eq, %21, %22 : vector<4x256xi32>
    %cst_7 = arith.constant 0.000000e+00 : f32
    %24 = vector.broadcast %cst_7 : f32 to vector<4x256xf32>
    %25 = arith.select %23, %1, %24 : vector<4x256xi1>, vector<4x256xf32>
    %cst_8 = arith.constant dense<0.000000e+00> : vector<256xf32>
    %26 = vector.multi_reduction <add>, %25, %cst_8 [0] : vector<4x256xf32> to vector<256xf32>
    %27 = vector.shape_cast %26 : vector<256xf32> to vector<1x256xf32>
    %28 = arith.addf %14, %20 : vector<1x256xf32>
    %29 = arith.subf %28, %27 : vector<1x256xf32>
    %cst_9 = arith.constant 0.000000e+00 : f32
    %30 = vector.broadcast %cst_9 : f32 to vector<1x256xf32>
    %31 = arith.select %12, %29, %30 : vector<1x256xi1>, vector<1x256xf32>
    %32 = vector.shape_cast %31 : vector<1x256xf32> to vector<1x1x256xf32>
    %cst_10 = arith.constant dense<0.000000e+00> : vector<1xf32>
    %33 = vector.multi_reduction <add>, %32, %cst_10 [1, 2] : vector<1x1x256xf32> to vector<1xf32>
    %34 = vector.shape_cast %33 : vector<1xf32> to vector<1x1x1xf32>
    %35 = vector.extract %34[0, 0, 0] : f32 from vector<1x1x1xf32>
    %36 = vector.broadcast %35 : f32 to vector<1x1xf32>
    %37 = arith.extui %12 : vector<1x256xi1> to vector<1x256xi32>
    %38 = arith.sitofp %37 : vector<1x256xi32> to vector<1x256xf32>
    %39 = vector.shape_cast %38 : vector<1x256xf32> to vector<1x1x256xf32>
    %cst_11 = arith.constant dense<0.000000e+00> : vector<1xf32>
    %40 = vector.multi_reduction <add>, %39, %cst_11 [1, 2] : vector<1x1x256xf32> to vector<1xf32>
    %41 = vector.shape_cast %40 : vector<1xf32> to vector<1x1x1xf32>
    %42 = vector.extract %41[0, 0, 0] : f32 from vector<1x1x1xf32>
    %43 = vector.broadcast %42 : f32 to vector<1x1xf32>
    %44 = tpu.iota {dimensions = array<i32: 1>} : vector<1x128xi32>
    %c0_i32 = arith.constant 0 : i32
    %45 = vector.broadcast %c0_i32 : i32 to vector<1x128xi32>
    %46 = arith.cmpi eq, %44, %45 : vector<1x128xi32>
    %cst_12 = arith.constant 0.000000e+00 : f32
    %47 = vector.shape_cast %36 : vector<1x1xf32> to vector<1x1xf32>
    %48 = vector.broadcast %47 : vector<1x1xf32> to vector<1x128xf32>
    %49 = vector.broadcast %cst_12 : f32 to vector<1x128xf32>
    %50 = arith.select %46, %48, %49 : vector<1x128xi1>, vector<1x128xf32>
    %c0_13 = arith.constant 0 : index
    %c0_14 = arith.constant 0 : index
    %51 = vector.load %arg4[%c0_13, %c0_14] : memref<1x128xf32, #tpu.memory_space<vmem>>, vector<1x128xf32>
    tpu.vector_store %arg4[%c0_13, %c0_14], %50 {strides = array<i32>} : memref<1x128xf32, #tpu.memory_space<vmem>>, vector<1x128xf32>,
    %c0_i32_15 = arith.constant 0 : i32
    %52 = vector.broadcast %c0_i32_15 : i32 to vector<1x128xi32>
    %53 = arith.cmpi eq, %44, %52 : vector<1x128xi32>
    %cst_16 = arith.constant 0.000000e+00 : f32
    %54 = vector.shape_cast %43 : vector<1x1xf32> to vector<1x1xf32>
    %55 = vector.broadcast %54 : vector<1x1xf32> to vector<1x128xf32>
    %56 = vector.broadcast %cst_16 : f32 to vector<1x128xf32>
    %57 = arith.select %53, %55, %56 : vector<1x128xi1>, vector<1x128xf32>
    %c0_17 = arith.constant 0 : index
    %c0_18 = arith.constant 0 : index
    %58 = vector.load %arg5[%c0_17, %c0_18] : memref<1x128xf32, #tpu.memory_space<vmem>>, vector<1x128xf32>
    tpu.vector_store %arg5[%c0_17, %c0_18], %57 {strides = array<i32>} : memref<1x128xf32, #tpu.memory_space<vmem>>, vector<1x128xf32>,
    return
  }
  func.func @transform_0(%arg0: i32, %arg1: i32) -> (i32, i32, i32) {
    %c0_i32 = arith.constant 0 : i32
    %c0_i32_0 = arith.constant 0 : i32
    return %arg0, %c0_i32, %arg1 : i32, i32, i32
  }
  func.func @transform_1(%arg0: i32, %arg1: i32) -> (i32, i32, i32) {
    %c0_i32 = arith.constant 0 : i32
    %c0_i32_0 = arith.constant 0 : i32
    return %arg0, %c0_i32, %arg1 : i32, i32, i32
  }
  func.func @transform_2(%arg0: i32, %arg1: i32) -> (i32, i32) {
    %c1_i32 = arith.constant 1 : i32
    %0 = arith.muli %arg0, %c1_i32 : i32
    %1 = arith.addi %0, %arg1 : i32
    %c0_i32 = arith.constant 0 : i32
    %c0_i32_0 = arith.constant 0 : i32
    return %c0_i32, %1 : i32, i32
  }
  func.func @transform_3(%arg0: i32, %arg1: i32) -> (i32, i32) {
    %c1_i32 = arith.constant 1 : i32
    %0 = arith.muli %arg0, %c1_i32 : i32
    %1 = arith.addi %0, %arg1 : i32
    %c0_i32 = arith.constant 0 : i32
    %c0_i32_0 = arith.constant 0 : i32
    return %c0_i32, %1 : i32, i32
  }
}

</mosaic_0001>

<bundles_post_ra>
// kernel: cross_entropy_loss_2d.1
= control target key start
LH: loop header
LB: loop body
LE: loop exit
PB: predicated region body
PF: predicated region fallthrough
CT: control target
= control target key end

     0   :  { %s592_s12 = smov 0   ;;  %s594_s13 = smov 0   ;;  %s645_s0 = inlined_call_operand.vmem [shape: f32[2,4,256], index: 0, kind: input, shape index: {}]   ;;  %s646_s1 = inlined_call_operand.vmem [shape: s32[2,1,256], index: 1, kind: input, shape index: {}]   ;;  %s647_s2 = inlined_call_operand.vmem [shape: f32[1,256], index: 2, kind: output, shape index: {0}]   ;;  %s648_s3 = inlined_call_operand.vmem [shape: f32[1,256], index: 3, kind: output, shape index: {1}]  }
   0x1   :  { %s596_s14 = smov 0  }
   0x2 LB: > { %s26_s15 = sadd.s32 1, %s564_s13  ;;  %p500_p0 = scmp.ge.s32.totalorder %s568_s14, 1  ;;  %s568_s14 = sphi %s596_s14, %s14_s14   ;;  %s564_s13 = sphi %s594_s13, %s650_s13   ;;  %s560_s12 = sphi %s592_s12, %s649_s12  }
   0x3   : > { %p28_p1 = scmp.ge.s32.totalorder %s26_s15, 2  ;;  %p179_p2 = scmp.lt.s32.totalorder %s568_s14, 3 }
   0x5   : > { %s652_s15 = smov (%p28_p1, %s26_s15), 0  ;;  %p180_p3 = pnand %p500_p0, %p179_p2 }
   0x6   : > { %p219_p4 = scmp.lt.s32.totalorder (!%p180_p3), %s560_s12, 1  ;;  %vm275_vm0 = vcmask (!%p180_p3), 1043456   ;;  %v249_v13 = vlaneseq (!%p180_p3)  ;;  %v570_v54 = vmov (!%p180_p3), 0   ;;  %vm352_vm5 = vcmask (!%p180_p3), 1040384  }
   0x7   : > { %183 = sbr.rel (%p180_p3) target bundleno = 297 (0x129), region = 28 }
   0x8   : > { %v261_v17 = vshrl.u32 (!%p180_p3), %v249_v13, 7 }
   0xa   : > { %v262_v20 = vsub.s32 (!%p180_p3), 0, %v261_v17  ;;  %v266_v23 = vsub.s32 (!%p180_p3), 1, %v261_v17 }
   0xe   : > { %s654_s12 = smov (!%p219_p4, %s560_s12), 1 }
   0xf   : > { %s508_s16 = sshll.u32 %s654_s12, 3  ;;  %s503_s20 = sshll.u32 %s654_s12, 1 }
  0x10   : > { %s226_s19 = scalar_lea.vmem %s645_s0, %s508_s16  ;;  %s235_s23 = scalar_lea.vmem %s646_s1, %s503_s20 }
  0x11   : > { %v247_v0 = vld [vmem:[%s226_s19] sm:$0xff]  ;;  %s240_s26 = scalar_lea.vmem %s647_s2, %s654_s12  ;;  %s245_s30 = scalar_lea.vmem %s648_s3, %s654_s12 }
  0x12   : > { %v273_v1 = vcombine.high %v247_v0, %v247_v0  ;;  %v276_v2 = vsel %vm275_vm0, %v247_v0, -inf  ;;  %v248_v22 = vld [vmem:[%s235_s23] sm:$0x3] }
  0x13   : > { %v277_v3 = vrot.slane %v276_v2, 4  ;;  %v323_v24 = vrot.slane %v248_v22, %v262_v20  ;;  %v327_v25 = vrot.slane %v248_v22, %v266_v23  ;;  %vm258_vm3 = vcmp.ne.s32.totalorder %v248_v22, 255 }
  0x14   : > { %v283_v4 = vsel %vm275_vm0, %v273_v1, -inf  ;;  %v259_v55 = vsel %vm258_vm3, 1, %v570_v54 }
  0x15   : > { %v278_v5 = vmax.f32 %v276_v2, %v277_v3  ;;  %v284_v6 = vrot.slane %v283_v4, 4  ;;  %vm328_vm1 = vcmp.eq.s32.totalorder %v261_v17, %v323_v24  ;;  %vm329_vm2 = vcmp.eq.s32.totalorder %v261_v17, %v327_v25 }
  0x16   : > { %v330_v26 = vsel %vm328_vm1, %v247_v0, 0.0  ;;  %v331_v30 = vsel %vm329_vm2, %v273_v1, 0.0  ;;  %v263_v59 = vrot.slane %v259_v55, %v262_v20  ;;  %v267_v63 = vrot.slane %v259_v55, %v266_v23 }
  0x17   : > { %v279_v7 = vrot.slane %v278_v5, 2  ;;  %v285_v8 = vmax.f32 %v283_v4, %v284_v6  ;;  %v332_v32 = vsel %vm275_vm0, %v330_v26, 0.0  ;;  %v339_v36 = vsel %vm275_vm0, %v331_v30, 0.0 }
  0x18   : > { %v333_v37 = vrot.slane %v332_v32, 4  ;;  %v340_v40 = vrot.slane %v339_v36, 4  ;;  %vm268_vm4 = vcmp.ne.s32.totalorder %v263_v59, 0  ;;  %vm269_vm6 = vcmp.ne.s32.totalorder %v267_v63, 0 }
  0x19   : > { %v280_v9 = vmax.f32 %v278_v5, %v279_v7  ;;  %v286_v10 = vrot.slane %v285_v8, 2  ;;  %v571_v7 = vmov 0.0  }
  0x1a   : > { %v334_v43 = vadd.f32 %v333_v37, %v332_v32  ;;  %v341_v46 = vadd.f32 %v340_v40, %v339_v36  ;;  %v250_v32 = vand.u32 127, %v249_v13 }
  0x1b   : > { %v281_v11 = vrot.slane %v280_v9, 1  ;;  %v287_v12 = vmax.f32 %v285_v8, %v286_v10  ;;  %v504_v8 = vsel %vm268_vm4, 1.0, %v571_v7 }
  0x1c   : > { %v335_v49 = vrot.slane %v334_v43, 2  ;;  %v342_v51 = vrot.slane %v341_v46, 2  ;;  %vm381_vm7 = vcmp.eq.s32.totalorder %v250_v32, 0 }
  0x1d   : > { %v282_v14 = vmax.f32 %v280_v9, %v281_v11  ;;  %v288_v15 = vrot.slane %v287_v12, 1  ;;  %v505_v9 = vsel %vm269_vm6, 1.0, %v571_v7 }
  0x1e   : > { %v336_v52 = vadd.f32 %v335_v49, %v334_v43  ;;  %v343_v53 = vadd.f32 %v342_v51, %v341_v46  ;;  %v370_v17 = vsel %vm352_vm5, %v505_v9, 0.0 }
  0x1f   : > { %v289_v16 = vmax.f32 %v287_v12, %v288_v15  ;;  %v369_v15 = vsel %vm352_vm5, %v504_v8, 0.0 }
  0x20   : > { %v337_v56 = vrot.slane %v336_v52, 1  ;;  %v344_v57 = vrot.slane %v343_v53, 1 }
  0x21   : > { %v292_v18 = vcombine.low %v282_v14, %v289_v16 }
  0x22   : > { %v338_v61 = vadd.f32 %v337_v56, %v336_v52  ;;  %v345_v1 = vadd.f32 %v344_v57, %v343_v53 }
  0x23   : > { %v294_v19 = vsub.f32 %v247_v0, %v292_v18 }
  0x25   : > { %v295_v21 = vmul.f32 1.442695, %v294_v19  ;;  %v371_v19 = vadd.f32 %v370_v17, %v369_v15 }
  0x27   : > { %540 = vpow2.f32 %v295_v21 }
  0x31   : > { %v541_v27 = vpop.eup %540 }
  0x32   : > { %v298_v28 = vcombine.high %v541_v27, %v541_v27  ;;  %v300_v29 = vsel %vm275_vm0, %v541_v27, 0.0 }
  0x33   : > { %v301_v31 = vrot.slane %v300_v29, 4 }
  0x34   : > { %v307_v33 = vsel %vm275_vm0, %v298_v28, 0.0 }
  0x35   : > { %v302_v34 = vadd.f32 %v301_v31, %v300_v29  ;;  %v308_v35 = vrot.slane %v307_v33, 4 }
  0x37   : > { %v303_v38 = vrot.slane %v302_v34, 2  ;;  %v309_v39 = vadd.f32 %v308_v35, %v307_v33 }
  0x39   : > { %v304_v41 = vadd.f32 %v303_v38, %v302_v34  ;;  %v310_v42 = vrot.slane %v309_v39, 2 }
  0x3b   : > { %v305_v44 = vrot.slane %v304_v41, 1  ;;  %v311_v45 = vadd.f32 %v310_v42, %v309_v39 }
  0x3d   : > { %v306_v47 = vadd.f32 %v305_v44, %v304_v41  ;;  %v312_v48 = vrot.slane %v311_v45, 1 }
  0x3f   : > { %v313_v50 = vadd.f32 %v312_v48, %v311_v45  ;;  %542 = vlog2.f32 %v306_v47 }
  0x41   : > { %544 = vlog2.f32 %v313_v50 }
  0x49   : > { %v543_v58 = vpop.eup %542 }
  0x4a   : > { %v315_v60 = vmul.f32 0.6931472, %v543_v58 }
  0x4b   : > { %v545_v62 = vpop.eup %544 }
  0x4c   : > { %v317_v0 = vmul.f32 0.6931472, %v545_v62  ;;  %v346_v2 = vadd.f32 %v315_v60, %v282_v14 }
  0x4e   : > { %v347_v3 = vadd.f32 %v317_v0, %v289_v16  ;;  %v348_v4 = vsub.f32 %v346_v2, %v338_v61 }
  0x50   : > { %v349_v5 = vsub.f32 %v347_v3, %v345_v1  ;;  %v350_v6 = vsel %vm268_vm4, %v348_v4, 0.0 }
  0x51   : > { %v353_v10 = vsel %vm352_vm5, %v350_v6, 0.0 }
  0x52   : > { %v351_v11 = vsel %vm269_vm6, %v349_v5, 0.0 }
  0x53   : > { %v354_v12 = vsel %vm352_vm5, %v351_v11, 0.0 }
  0x54   : > { %v355_v18 = vadd.f32 %v354_v12, %v353_v10 }
  0x56   : > { %356 = vadd.xlane.f32.xlu0 %v355_v18 }
  0x5a   : > { %372 = vadd.xlane.f32.xlu0 %v371_v19 }
  0xe3   : > { %v357_v14 = vpop.xlane.xlu0 %356 }
  0xe4   : > { %v358_v20 = vrot.slane %v357_v14, 4 }
  0xe6   : > { %v359_v16 = vadd.f32 %v358_v20, %v357_v14 }
  0xe7   : > { %v373_v21 = vpop.xlane.xlu0 %372 }
  0xe8   : > { %v360_v22 = vrot.slane %v359_v16, 2  ;;  %v374_v23 = vrot.slane %v373_v21, 4 }
  0xea   : > { %v375_v24 = vadd.f32 %v374_v23, %v373_v21  ;;  %v361_v25 = vadd.f32 %v360_v22, %v359_v16 }
  0xec   : > { %v376_v26 = vrot.slane %v375_v24, 2  ;;  %v362_v27 = vrot.slane %v361_v25, 1 }
  0xee   : > { %v377_v28 = vadd.f32 %v376_v26, %v375_v24  ;;  %v363_v29 = vadd.f32 %v362_v27, %v361_v25 }
  0xf0   : > { %509 = vpush %v363_v29  ;;  %v378_v30 = vrot.slane %v377_v28, 1 }
  0xf2   : > { %v379_v31 = vadd.f32 %v378_v30, %v377_v28 }
  0xf4   : > { %511 = vpush %v379_v31 }
 0x121   : > { %s510_s27 = spop %509 }
 0x122   : > { %v382_v33 = vstv %s510_s27 }
 0x123   : > { %v383_v34 = vsel %vm381_vm7, %v382_v33, 0.0 }
 0x124   : > { %384 = vst [vmem:[%s240_s26] sm:$0x1] %v383_v34 }
 0x125   : > { %s512_s4 = spop %511 }
 0x126   : > { %v385_v35 = vstv %s512_s4 }
 0x127   : > { %v386_v36 = vsel %vm381_vm7, %v385_v35, 0.0 }
 0x128   : > { %387 = vst [vmem:[%s245_s30] sm:$0x1] %v386_v36 }
 0x129 PF: > { %s14_s14 = sadd.s32 1, %s568_s14   ;;  %s649_s12 = smov %s564_s13 }
 0x12a   : > { %p11_p5 = scmp.ge.s32.totalorder %s14_s14, 4   ;;  %s650_s13 = smov %s652_s15 }
 0x12c   :  { %13 = sbr.rel (!%p11_p5) target bundleno = 2 (0x2), region = 73 }

</bundles_post_ra>
